<compile_context>
chip_gen: v6e
topology: v6e:2x2x1
jax: 0.10.0
libtpu: 0.0.40
codegen_flags: <defaults>
</compile_context>

<pallas_src>
import jax
import jax.numpy as jnp
from jax import lax
from jax.experimental import pallas as pl
from jax.experimental.pallas import tpu as pltpu

_BN_EPS = 1e-5


# ------------------------------ in-kernel math helpers ------------------------------

def _erf(z, approx_recip=False):
    # A&S 7.1.26 polynomial approximation of erf, |err| < 1.5e-7 (exp/abs/where only).
    a1, a2, a3, a4, a5 = 0.254829592, -0.284496736, 1.421413741, -1.453152027, 1.061405429
    p = 0.3275911
    s = jnp.where(z >= 0.0, 1.0, -1.0)
    az = jnp.abs(z)
    den = 1.0 + p * az
    # perf path: EUP reciprocal (frees the VPU divide sequence); exact divide on the f32 path
    t = pl.reciprocal(den, approx=True) if approx_recip else 1.0 / den
    poly = ((((a5 * t + a4) * t + a3) * t + a2) * t + a1) * t
    return s * (1.0 - poly * jnp.exp(-az * az))


def _gelu(x, approx_recip=False):
    return 0.5 * x * (1.0 + _erf(x * 0.7071067811865476, approx_recip))


def _conv3(h, wc_ref, bc_ref, l2):
    """Conv1d(k=3, pad=1) over flattened rows (rows = b_tile * l2, whole batch elements).

    Neighbours come from pltpu.roll (XLU); rows crossing a batch-element boundary are zeroed
    by masks built from an in-kernel iota.  The 3 taps are 3 accumulated MXU dots.
    """
    rows, _ = h.shape
    mm = wc_ref.dtype
    pos = lax.broadcasted_iota(jnp.int32, (rows, 1), 0) % l2
    h_mm = h.astype(mm)
    hm = pltpu.roll(h_mm, shift=1, axis=0) * (pos != 0).astype(mm)              # h[j-1]
    hp = pltpu.roll(h_mm, shift=rows - 1, axis=0) * (pos != l2 - 1).astype(mm)  # h[j+1]
    acc = jnp.dot(hm, wc_ref[0], preferred_element_type=jnp.float32)
    acc = acc + jnp.dot(h_mm, wc_ref[1], preferred_element_type=jnp.float32)
    acc = acc + jnp.dot(hp, wc_ref[2], preferred_element_type=jnp.float32)
    return acc + bc_ref[...]


def _store_with_stats(acc, a_out_ref, st_ref):
    """Store pre-BN activation tile + per-tile per-channel (sum, sumsq) for two-pass BN."""
    bt, l2, o_pad = a_out_ref.shape
    a_io = acc.astype(a_out_ref.dtype)             # (rows, o_pad), io dtype
    a_out_ref[...] = a_io.reshape(bt, l2, o_pad)
    a_f = a_io.astype(jnp.float32)                 # stats on the values the next pass will read
    s = jnp.sum(a_f, axis=0, keepdims=True)
    q = jnp.sum(a_f * a_f, axis=0, keepdims=True)
    st_ref[...] = jnp.concatenate([s, q], axis=0)[None]


# ------------------------------------- kernels --------------------------------------

def _up_conv_kernel(xc_ref, wup_ref, bup_ref, wc_ref, bc_ref, a_ref, st_ref):
    """ConvTranspose1d(k=2,s=2) folded into one matmul (no zero K), then conv1 + BN1 stats."""
    bt, l, cin = xc_ref.shape
    l2, o_pad = a_ref.shape[1], a_ref.shape[2]
    x2 = xc_ref[...].reshape(bt * l, cin)
    # (rows_in, Cin) @ (Cin, 2*O_pad): columns = [tap-0 | tap-1]
    y = jnp.dot(x2, wup_ref[...], preferred_element_type=jnp.float32)
    # row-major reshape interleaves the two taps: output row 2t+k <- (input row t, col block k)
    h0 = y.reshape(bt * l2, o_pad) + bup_ref[...]
    acc = _conv3(h0, wc_ref, bc_ref, l2)
    _store_with_stats(acc, a_ref, st_ref)


def _norm_gelu_conv_kernel(a_in_ref, sc_ref, sh_ref, wc_ref, bc_ref, a_out_ref, st_ref):
    """BN_{j-1} (folded scale/shift) + GELU, then conv_j + per-tile BN_j partial sums."""
    bt, l2, o_pad = a_in_ref.shape
    a = a_in_ref[...].reshape(bt * l2, o_pad).astype(jnp.float32)
    h = _gelu(a * sc_ref[...] + sh_ref[...], approx_recip=(wc_ref.dtype != jnp.float32))
    acc = _conv3(h, wc_ref, bc_ref, l2)
    _store_with_stats(acc, a_out_ref, st_ref)


def _norm_gelu_out_kernel(a_in_ref, sc_ref, sh_ref, out_ref):
    """Final BN_4 + GELU -> output tile."""
    bt, l2, o_pad = a_in_ref.shape
    a = a_in_ref[...].reshape(bt * l2, o_pad).astype(jnp.float32)
    h = _gelu(a * sc_ref[...] + sh_ref[...], approx_recip=(a_in_ref.dtype != jnp.float32))
    out_ref[...] = h.reshape(bt, l2, o_pad).astype(out_ref.dtype)


# ------------------------------------- wrapper ---------------------------------------

def _fold_bn(st_tiles, count, gamma, beta):
    """Reduce per-tile (sum, sumsq) and fold training-mode BN into per-channel scale/shift."""
    s = jnp.sum(st_tiles[:, 0, :], axis=0)
    q = jnp.sum(st_tiles[:, 1, :], axis=0)
    mean = s / count
    var = jnp.maximum(q / count - mean * mean, 0.0)    # biased variance, f32 accumulation
    scale = gamma * lax.rsqrt(var + _BN_EPS)
    shift = beta - mean * scale
    return scale.reshape(1, -1), shift.reshape(1, -1)


def unet_up_forward(x, skip, params, *, matmul_dtype=jnp.bfloat16, b_tile=None):
    f32 = jnp.float32
    n, cx, l = x.shape
    cin = 2 * cx
    l2 = 2 * l
    o_ch = params["bt"].shape[0]
    o_pad = -(-o_ch // 128) * 128                      # lane-dense channel padding
    pc = o_pad - o_ch
    mm = matmul_dtype
    io = f32 if mm == jnp.float32 else jnp.bfloat16    # inter-layer HBM buffer dtype
    mm_b = jnp.dtype(mm).itemsize
    io_b = jnp.dtype(io).itemsize

    # Tile = whole batch elements (the conv's zero padding is exactly a batch-element boundary,
    # so tiles need no halo).  Keep the resident slab a few MiB so double-buffered tiles fit
    # v7x's 64 MiB VMEM as well as v5e/v6e's 128 MiB.
    if b_tile is None:
        row_budget = max(l2, (6 << 20) // (o_pad * 32))
        b_tile = 1
        for d in range(1, n + 1):
            if n % d == 0 and d * l2 <= row_budget:
                b_tile = d
    assert n % b_tile == 0, "b_tile must divide N (BN statistics count real rows only)"
    n_tiles = n // b_tile
    rows = b_tile * l2
    # TODO(synk): if a single batch element's (2L, O_pad) slab itself exceeds VMEM, the length
    # axis would additionally need halo'd tiling of the k=3 conv; not implemented here.

    # ---- layout glue (pure reshapes / pads, zero FLOPs) ----
    xc = jnp.transpose(jnp.concatenate([x, skip], axis=1), (0, 2, 1)).astype(mm)   # (N, L, Cin)

    wt = params["Wt"].astype(f32)                                                  # (Cin, O, 2)
    wup = jnp.concatenate([jnp.pad(wt[:, :, 0], ((0, 0), (0, pc))),
                           jnp.pad(wt[:, :, 1], ((0, 0), (0, pc)))], axis=1).astype(mm)
    bup = jnp.pad(params["bt"].astype(f32), (0, pc)).reshape(1, o_pad)

    wcs, bcs, gammas, betas = [], [], [], []
    for i in range(4):
        w = params["conv_w"][i].astype(f32)                                        # (O, O, 3)
        wcs.append(jnp.stack([jnp.pad(w[:, :, k].T, ((0, pc), (0, pc)))
                              for k in range(3)]).astype(mm))                      # (3, Op, Op)
        bcs.append(jnp.pad(params["conv_b"][i].astype(f32), (0, pc)).reshape(1, o_pad))
        gammas.append(jnp.pad(params["bn_g"][i].astype(f32), (0, pc), constant_values=1.0))
        betas.append(jnp.pad(params["bn_b"][i].astype(f32), (0, pc)))

    # ---- footprint-derived VMEM limit, capped at 48 MiB (fits v7x's 64 MiB per TC) ----
    est = (rows * o_pad * (4 * io_b + 3 * mm_b + 20)          # double-buffered act I/O + temps
           + rows * cin * 2 * mm_b                            # xc tile (pass 0)
           + (2 * cin * o_pad + 3 * o_pad * o_pad) * mm_b     # resident weights
           + (2 << 20))                                       # slack
    cparams = pltpu.CompilerParams(
        dimension_semantics=("parallel",),                    # batch tiles are independent
        vmem_limit_bytes=int(min(48 << 20, max(32 << 20, 2 * est))))

    grid = (n_tiles,)
    act_spec = pl.BlockSpec((b_tile, l2, o_pad), lambda i: (i, 0, 0))
    st_spec = pl.BlockSpec((1, 2, o_pad), lambda i: (i, 0, 0))
    vec_spec = pl.BlockSpec((1, o_pad), lambda i: (0, 0))
    wc_spec = pl.BlockSpec((3, o_pad, o_pad), lambda i: (0, 0, 0))
    act_shape = jax.ShapeDtypeStruct((n, l2, o_pad), io)
    st_shape = jax.ShapeDtypeStruct((n_tiles, 2, o_pad), f32)
    count = float(n * l2)

    # ---- pass 0: upsample + conv1 (+ per-tile BN1 partial sums) ----
    a_cur, st = pl.pallas_call(
        _up_conv_kernel,
        grid=grid,
        in_specs=[pl.BlockSpec((b_tile, l, cin), lambda i: (i, 0, 0)),
                  pl.BlockSpec((cin, 2 * o_pad), lambda i: (0, 0)),
                  vec_spec, wc_spec, vec_spec],
        out_specs=(act_spec, st_spec),
        out_shape=(act_shape, st_shape),
        compiler_params=cparams,
    )(xc, wup, bup, wcs[0], bcs[0])

    # ---- passes 1..3: BN_{j-1} + GELU + conv_j (+ per-tile BN_j partial sums) ----
    for j in range(1, 4):
        scale, shift = _fold_bn(st, count, gammas[j - 1], betas[j - 1])
        a_cur, st = pl.pallas_call(
            _norm_gelu_conv_kernel,
            grid=grid,
            in_specs=[act_spec, vec_spec, vec_spec, wc_spec, vec_spec],
            out_specs=(act_spec, st_spec),
            out_shape=(act_shape, st_shape),
            compiler_params=cparams,
        )(a_cur, scale, shift, wcs[j], bcs[j])

    # ---- pass 4: BN_4 + GELU -> output ----
    scale, shift = _fold_bn(st, count, gammas[3], betas[3])
    out = pl.pallas_call(
        _norm_gelu_out_kernel,
        grid=grid,
        in_specs=[act_spec, vec_spec, vec_spec],
        out_specs=act_spec,
        out_shape=jax.ShapeDtypeStruct((n, l2, o_pad), f32),
        compiler_params=cparams,
    )(a_cur, scale, shift)

    # drop channel padding, back to (N, O, 2L)  (layout glue only)
    return jnp.transpose(out[:, :, :o_ch], (0, 2, 1))


# ---------------------------------- params / reference ----------------------------------

def init_params(key, in_channels, out_channels):
    ks = jax.random.split(key, 20)
    params = {
        "Wt": 0.3 * jax.random.normal(ks[0], (in_channels, out_channels, 2), jnp.float32),
        "bt": 0.1 * jax.random.normal(ks[1], (out_channels,), jnp.float32),
        "conv_w": [], "conv_b": [], "bn_g": [], "bn_b": [],
    }
    i = 2
    for _ in range(4):  # rcb1.conv1, rcb1.conv2, rcb2.conv1, rcb2.conv2
        params["conv_w"].append(0.3 * jax.random.normal(ks[i], (out_channels, out_channels, 3), jnp.float32)); i += 1
        params["conv_b"].append(0.1 * jax.random.normal(ks[i], (out_channels,), jnp.float32)); i += 1
        params["bn_g"].append(1.0 + 0.1 * jax.random.normal(ks[i], (out_channels,), jnp.float32)); i += 1
        params["bn_b"].append(0.1 * jax.random.normal(ks[i], (out_channels,), jnp.float32)); i += 1
    return params


def unet_up_reference(x, skip, params):
    # Independent pure-JAX reference in NCL layout (exact erf GELU, f32, training-mode BN).
    f32 = jnp.float32
    x = x.astype(f32); skip = skip.astype(f32)
    n, _, l = x.shape
    o_ch = params["bt"].shape[0]
    xc = jnp.concatenate([x, skip], axis=1)                           # (N, 2Cx, L)
    y = jnp.einsum('ncl,cok->nolk', xc, params["Wt"])                 # (N, O, L, 2)
    h = y.reshape(n, o_ch, 2 * l) + params["bt"][None, :, None]
    for i in range(4):
        W, b = params["conv_w"][i], params["conv_b"][i]
        g, be = params["bn_g"][i], params["bn_b"][i]
        hp = jnp.pad(h, ((0, 0), (0, 0), (1, 1)))
        conv = sum(jnp.einsum('ncj,oc->noj', hp[:, :, k:k + 2 * l], W[:, :, k]) for k in range(3))
        conv = conv + b[None, :, None]
        m = conv.mean(axis=(0, 2), keepdims=True)
        v = ((conv - m) ** 2).mean(axis=(0, 2), keepdims=True)
        hn = (conv - m) / jnp.sqrt(v + _BN_EPS) * g[None, :, None] + be[None, :, None]
        h = 0.5 * hn * (1.0 + jax.scipy.special.erf(hn * 0.7071067811865476))
    return h


if __name__ == "__main__":
    key = jax.random.PRNGKey(0)
    kx, ksk, kp = jax.random.split(key, 3)
    N, Cx, L = 2, 4, 8                       # x, skip: (2, 4, 8); concat -> in_channels = 8
    in_channels, out_channels = 2 * Cx, 4
    x = jax.random.normal(kx, (N, Cx, L), jnp.float32)
    skip = jax.random.normal(ksk, (N, Cx, L), jnp.float32)
    params = init_params(kp, in_channels, out_channels)

    ref = jax.block_until_ready(unet_up_reference(x, skip, params))

    # Exact-precision path (f32 operands + f32 inter-layer buffers); b_tile=1 forces a 2-step
    # grid so the cross-tile two-pass BN reduction is exercised.
    out_f32 = jax.block_until_ready(
        unet_up_forward(x, skip, params, matmul_dtype=jnp.float32, b_tile=1))
    assert out_f32.shape == (N, out_channels, 2 * L), out_f32.shape
    assert jnp.allclose(out_f32, ref, atol=1e-4, rtol=1e-4), float(jnp.max(jnp.abs(out_f32 - ref)))

    # Performance path: bf16 MXU operands, bf16 inter-layer HBM buffers, f32 accumulation/BN,
    # EUP reciprocal in the GELU; auto tile size.  Sanity-bound the compounded bf16 error.
    out_bf16 = jax.block_until_ready(unet_up_forward(x, skip, params))
    assert out_bf16.shape == (N, out_channels, 2 * L)
    assert bool(jnp.all(jnp.isfinite(out_bf16)))
    assert float(jnp.max(jnp.abs(out_bf16 - ref))) < 2e-1, float(jnp.max(jnp.abs(out_bf16 - ref)))

    print("KERNEL_OK")
</pallas_src>

<mosaic_0001>
module attributes {stable_mosaic.version = 11 : i64} {
  func.func @_up_conv_kernel(%arg0: i32, %arg1: memref<1x8x8xf32, #tpu.memory_space<vmem>>, %arg2: memref<8x256xf32, #tpu.memory_space<vmem>>, %arg3: memref<1x128xf32, #tpu.memory_space<vmem>>, %arg4: memref<3x128x128xf32, #tpu.memory_space<vmem>>, %arg5: memref<1x128xf32, #tpu.memory_space<vmem>>, %arg6: memref<1x16x128xf32, #tpu.memory_space<vmem>>, %arg7: memref<1x2x128xf32, #tpu.memory_space<vmem>>) attributes {dimension_semantics = [#tpu.dimension_semantics<parallel>], iteration_bounds = array<i64: 2>, scalar_prefetch = 0 : i64, scratch_operands = 0 : i64, tpu.core_type = #tpu.core_type<tc>, window_params = [{transform_indices = @transform_0, window_bounds = array<i64: 1, 8, 8>}, {pipeline_mode = #tpu.pipeline_mode<synchronous>, transform_indices = @transform_1, window_bounds = array<i64: 8, 256>}, {pipeline_mode = #tpu.pipeline_mode<synchronous>, transform_indices = @transform_2, window_bounds = array<i64: 1, 128>}, {pipeline_mode = #tpu.pipeline_mode<synchronous>, transform_indices = @transform_3, window_bounds = array<i64: 3, 128, 128>}, {pipeline_mode = #tpu.pipeline_mode<synchronous>, transform_indices = @transform_4, window_bounds = array<i64: 1, 128>}, {transform_indices = @transform_5, window_bounds = array<i64: 1, 16, 128>}, {transform_indices = @transform_6, window_bounds = array<i64: 1, 2, 128>}]} {
    %c0 = arith.constant 0 : index
    %c0_0 = arith.constant 0 : index
    %c0_1 = arith.constant 0 : index
    %0 = vector.load %arg1[%c0, %c0_0, %c0_1] : memref<1x8x8xf32, #tpu.memory_space<vmem>>, vector<1x8x8xf32>
    %1 = vector.shape_cast %0 : vector<1x8x8xf32> to vector<8x8xf32>
    %c0_2 = arith.constant 0 : index
    %c0_3 = arith.constant 0 : index
    %2 = vector.load %arg2[%c0_2, %c0_3] : memref<8x256xf32, #tpu.memory_space<vmem>>, vector<8x256xf32>
    %cst = arith.constant dense<0.000000e+00> : vector<8x256xf32>
    %3 = tpu.matmul %1, %2, %cst {dimension_numbers = #tpu.dot_dimension_numbers<[1], [0], [0], [1], [0, 0, 1, 1], [], []>} : vector<8x8xf32>, vector<8x256xf32>, vector<8x256xf32> -> vector<8x256xf32>
    %4 = vector.shape_cast %3 : vector<8x256xf32> to vector<16x128xf32>
    %c0_4 = arith.constant 0 : index
    %c0_5 = arith.constant 0 : index
    %5 = vector.load %arg3[%c0_4, %c0_5] : memref<1x128xf32, #tpu.memory_space<vmem>>, vector<1x128xf32>
    %6 = vector.broadcast %5 : vector<1x128xf32> to vector<16x128xf32>
    %7 = arith.addf %4, %6 : vector<16x128xf32>
    %8 = tpu.iota {dimensions = array<i32: 0>} : vector<16x1xi32>
    %c16_i32 = arith.constant 16 : i32
    %c0_i32 = arith.constant 0 : i32
    %9 = arith.cmpi eq, %c16_i32, %c0_i32 : i32
    %c1_i32 = arith.constant 1 : i32
    %10 = arith.select %9, %c1_i32, %c16_i32 : i32
    %11 = vector.broadcast %10 : i32 to vector<16x1xi32>
    %12 = arith.remsi %8, %11 : vector<16x1xi32>
    %c0_i32_6 = arith.constant 0 : i32
    %13 = vector.broadcast %c0_i32_6 : i32 to vector<16x1xi32>
    %14 = arith.cmpi ne, %12, %13 : vector<16x1xi32>
    %c0_i32_7 = arith.constant 0 : i32
    %15 = vector.broadcast %c0_i32_7 : i32 to vector<16x1xi32>
    %16 = arith.cmpi slt, %12, %15 : vector<16x1xi32>
    %c0_i32_8 = arith.constant 0 : i32
    %17 = arith.cmpi slt, %10, %c0_i32_8 : i32
    %18 = vector.broadcast %17 : i1 to vector<16x1xi1>
    %19 = vector.broadcast %18 : vector<16x1xi1> to vector<16x1xi1>
    %20 = arith.xori %16, %19 : vector<16x1xi1>
    %21 = arith.andi %20, %14 : vector<16x1xi1>
    %22 = vector.broadcast %10 : i32 to vector<16x1xi32>
    %23 = arith.addi %12, %22 : vector<16x1xi32>
    %24 = arith.select %21, %23, %12 : vector<16x1xi1>, vector<16x1xi32>
    %c1_i32_9 = arith.constant 1 : i32
    %25 = tpu.dynamic_rotate %7 by %c1_i32_9 dim 0 : vector<16x128xf32>, i32 -> vector<16x128xf32>
    %c0_i32_10 = arith.constant 0 : i32
    %26 = vector.broadcast %c0_i32_10 : i32 to vector<16x1xi32>
    %27 = arith.cmpi ne, %24, %26 : vector<16x1xi32>
    %28 = arith.extui %27 : vector<16x1xi1> to vector<16x1xi32>
    %29 = arith.sitofp %28 : vector<16x1xi32> to vector<16x1xf32>
    %30 = vector.broadcast %29 : vector<16x1xf32> to vector<16x128xf32>
    %31 = arith.mulf %25, %30 : vector<16x128xf32>
    %c15_i32 = arith.constant 15 : i32
    %32 = tpu.dynamic_rotate %7 by %c15_i32 dim 0 : vector<16x128xf32>, i32 -> vector<16x128xf32>
    %c15_i32_11 = arith.constant 15 : i32
    %33 = vector.broadcast %c15_i32_11 : i32 to vector<16x1xi32>
    %34 = arith.cmpi ne, %24, %33 : vector<16x1xi32>
    %35 = arith.extui %34 : vector<16x1xi1> to vector<16x1xi32>
    %36 = arith.sitofp %35 : vector<16x1xi32> to vector<16x1xf32>
    %37 = vector.broadcast %36 : vector<16x1xf32> to vector<16x128xf32>
    %38 = arith.mulf %32, %37 : vector<16x128xf32>
    %c0_12 = arith.constant 0 : index
    %c0_13 = arith.constant 0 : index
    %c0_14 = arith.constant 0 : index
    %39 = vector.load %arg4[%c0_12, %c0_13, %c0_14] : memref<3x128x128xf32, #tpu.memory_space<vmem>>, vector<1x128x128xf32>
    %40 = vector.shape_cast %39 : vector<1x128x128xf32> to vector<128x128xf32>
    %cst_15 = arith.constant dense<0.000000e+00> : vector<16x128xf32>
    %41 = tpu.matmul %31, %40, %cst_15 {dimension_numbers = #tpu.dot_dimension_numbers<[1], [0], [0], [1], [0, 0, 1, 1], [], []>} : vector<16x128xf32>, vector<128x128xf32>, vector<16x128xf32> -> vector<16x128xf32>
    %c1 = arith.constant 1 : index
    %c0_16 = arith.constant 0 : index
    %c0_17 = arith.constant 0 : index
    %42 = vector.load %arg4[%c1, %c0_16, %c0_17] : memref<3x128x128xf32, #tpu.memory_space<vmem>>, vector<1x128x128xf32>
    %43 = vector.shape_cast %42 : vector<1x128x128xf32> to vector<128x128xf32>
    %cst_18 = arith.constant dense<0.000000e+00> : vector<16x128xf32>
    %44 = tpu.matmul %7, %43, %cst_18 {dimension_numbers = #tpu.dot_dimension_numbers<[1], [0], [0], [1], [0, 0, 1, 1], [], []>} : vector<16x128xf32>, vector<128x128xf32>, vector<16x128xf32> -> vector<16x128xf32>
    %45 = arith.addf %41, %44 : vector<16x128xf32>
    %c2 = arith.constant 2 : index
    %c0_19 = arith.constant 0 : index
    %c0_20 = arith.constant 0 : index
    %46 = vector.load %arg4[%c2, %c0_19, %c0_20] : memref<3x128x128xf32, #tpu.memory_space<vmem>>, vector<1x128x128xf32>
    %47 = vector.shape_cast %46 : vector<1x128x128xf32> to vector<128x128xf32>
    %cst_21 = arith.constant dense<0.000000e+00> : vector<16x128xf32>
    %48 = tpu.matmul %38, %47, %cst_21 {dimension_numbers = #tpu.dot_dimension_numbers<[1], [0], [0], [1], [0, 0, 1, 1], [], []>} : vector<16x128xf32>, vector<128x128xf32>, vector<16x128xf32> -> vector<16x128xf32>
    %49 = arith.addf %45, %48 : vector<16x128xf32>
    %c0_22 = arith.constant 0 : index
    %c0_23 = arith.constant 0 : index
    %50 = vector.load %arg5[%c0_22, %c0_23] : memref<1x128xf32, #tpu.memory_space<vmem>>, vector<1x128xf32>
    %51 = vector.broadcast %50 : vector<1x128xf32> to vector<16x128xf32>
    %52 = arith.addf %49, %51 : vector<16x128xf32>
    %53 = vector.shape_cast %52 : vector<16x128xf32> to vector<1x16x128xf32>
    %c0_24 = arith.constant 0 : index
    %c0_25 = arith.constant 0 : index
    %c0_26 = arith.constant 0 : index
    %54 = vector.load %arg6[%c0_24, %c0_25, %c0_26] : memref<1x16x128xf32, #tpu.memory_space<vmem>>, vector<1x16x128xf32>
    tpu.vector_store %arg6[%c0_24, %c0_25, %c0_26], %53 {strides = array<i32>} : memref<1x16x128xf32, #tpu.memory_space<vmem>>, vector<1x16x128xf32>,
    %cst_27 = arith.constant dense<0.000000e+00> : vector<128xf32>
    %55 = vector.multi_reduction <add>, %52, %cst_27 [0] : vector<16x128xf32> to vector<128xf32>
    %56 = vector.shape_cast %55 : vector<128xf32> to vector<1x128xf32>
    %57 = arith.mulf %52, %52 : vector<16x128xf32>
    %cst_28 = arith.constant dense<0.000000e+00> : vector<128xf32>
    %58 = vector.multi_reduction <add>, %57, %cst_28 [0] : vector<16x128xf32> to vector<128xf32>
    %59 = vector.shape_cast %58 : vector<128xf32> to vector<1x128xf32>
    %60 = tpu.concatenate %56, %59 in 0 : vector<1x128xf32>, vector<1x128xf32> -> vector<2x128xf32>
    %61 = vector.shape_cast %60 : vector<2x128xf32> to vector<1x2x128xf32>
    %c0_29 = arith.constant 0 : index
    %c0_30 = arith.constant 0 : index
    %c0_31 = arith.constant 0 : index
    %62 = vector.load %arg7[%c0_29, %c0_30, %c0_31] : memref<1x2x128xf32, #tpu.memory_space<vmem>>, vector<1x2x128xf32>
    tpu.vector_store %arg7[%c0_29, %c0_30, %c0_31], %61 {strides = array<i32>} : memref<1x2x128xf32, #tpu.memory_space<vmem>>, vector<1x2x128xf32>,
    return
  }
  func.func @transform_0(%arg0: i32) -> (i32, i32, i32) {
    %c0_i32 = arith.constant 0 : i32
    %c0_i32_0 = arith.constant 0 : i32
    %c0_i32_1 = arith.constant 0 : i32
    return %arg0, %c0_i32, %c0_i32_0 : i32, i32, i32
  }
  func.func @transform_1(%arg0: i32) -> (i32, i32) {
    %c0_i32 = arith.constant 0 : i32
    %c0_i32_0 = arith.constant 0 : i32
    %c0_i32_1 = arith.constant 0 : i32
    return %c0_i32, %c0_i32_0 : i32, i32
  }
  func.func @transform_2(%arg0: i32) -> (i32, i32) {
    %c0_i32 = arith.constant 0 : i32
    %c0_i32_0 = arith.constant 0 : i32
    %c0_i32_1 = arith.constant 0 : i32
    return %c0_i32, %c0_i32_0 : i32, i32
  }
  func.func @transform_3(%arg0: i32) -> (i32, i32, i32) {
    %c0_i32 = arith.constant 0 : i32
    %c0_i32_0 = arith.constant 0 : i32
    %c0_i32_1 = arith.constant 0 : i32
    %c0_i32_2 = arith.constant 0 : i32
    return %c0_i32, %c0_i32_0, %c0_i32_1 : i32, i32, i32
  }
  func.func @transform_4(%arg0: i32) -> (i32, i32) {
    %c0_i32 = arith.constant 0 : i32
    %c0_i32_0 = arith.constant 0 : i32
    %c0_i32_1 = arith.constant 0 : i32
    return %c0_i32, %c0_i32_0 : i32, i32
  }
  func.func @transform_5(%arg0: i32) -> (i32, i32, i32) {
    %c0_i32 = arith.constant 0 : i32
    %c0_i32_0 = arith.constant 0 : i32
    %c0_i32_1 = arith.constant 0 : i32
    return %arg0, %c0_i32, %c0_i32_0 : i32, i32, i32
  }
  func.func @transform_6(%arg0: i32) -> (i32, i32, i32) {
    %c0_i32 = arith.constant 0 : i32
    %c0_i32_0 = arith.constant 0 : i32
    %c0_i32_1 = arith.constant 0 : i32
    return %arg0, %c0_i32, %c0_i32_0 : i32, i32, i32
  }
}

</mosaic_0001>

<bundles_post_ra>
// kernel: tpu_custom_call.1
= control target key start
LH: loop header
LB: loop body
LE: loop exit
PB: predicated region body
PF: predicated region fallthrough
CT: control target
= control target key end

     0   :  { %s1655_s0 = inlined_call_operand.hbm [shape: f32[2,8,8], index: 0, kind: input, shape index: {}]   ;;  %s1656_s1 = inlined_call_operand.hbm [shape: f32[8,256], index: 1, kind: input, shape index: {}]   ;;  %s1657_s2 = inlined_call_operand.vmem [shape: f32[1,128], index: 2, kind: input, shape index: {}]   ;;  %s1658_s3 = inlined_call_operand.hbm [shape: f32[3,128,128], index: 3, kind: input, shape index: {}]   ;;  %s1659_s4 = inlined_call_operand.vmem [shape: f32[1,128], index: 4, kind: input, shape index: {}]   ;;  %s1660_s5 = inlined_call_operand.hbm [shape: f32[2,16,128], index: 5, kind: output, shape index: {0}]   ;;  %s1661_s6 = inlined_call_operand.hbm [shape: f32[2,2,128], index: 6, kind: output, shape index: {1}]  }
   0x1   :  { %1666 = sst [smem:[#allocation15_spill]] %s1656_s1 }
   0x2   :  { %12 = vsyncpa [#allocation3], 0 }
   0x3   :  { %14 = vsyncpa [#allocation3 + $0x1], 0 }
   0x4   :  { %15 = vsyncpa [#allocation6], 0 }
   0x5   :  { %16 = vsyncpa [#allocation4], 0 }
   0x6   :  { %18 = vsyncpa [#allocation4 + $0x1], 0 }
   0x7   :  { %19 = vsyncpa [#allocation10], 0 }
   0x8   :  { %21 = vsyncpa [#allocation10 + $0x1], 0  ;;  %s1417_s21 = smov 0   ;;  %s1419_s22 = smov 0  }
   0x9   :  { %s1421_s23 = smov 0   ;;  %s1423_s24 = smov 0  }
   0xa LB: > { %s1438_s25 = sadd.s32 4294967295, %s1369_s24   ;;  %s928_s26 = sadd.s32 4294967294, %s1369_s24   ;;  %s1369_s24 = sphi %s1423_s24, %s1685_s24   ;;  %s1365_s23 = sphi %s1421_s23, %s1684_s23   ;;  %s1361_s22 = sphi %s1419_s22, %s1683_s22   ;;  %s1357_s21 = sphi %s1417_s21, %s1682_s21  }
   0xb   : > { %p47_p0 = scmp.ne.s32.totalorder %s1361_s22, %s1357_s21  ;;  %p1662_p1 = scmp.eq.s32.totalorder %s1438_s25, 0 }
   0xc   : > { %p161_p3 = scmp.eq.s32.totalorder %s928_s26, 1  ;;  %p929_p5 = scmp.ge.s32.totalorder %s1369_s24, 1 }
   0xd   : > { %p1447_p4 = por %p1662_p1, %p47_p0  ;;  %p194_p7 = scmp.lt.s32.totalorder %s1369_s24, 3 }
   0xe   : > { %p1452_p6 = por %p161_p3, %p47_p0  ;;  %s1371_s30 = smov [#allocation5]  }
   0xf   : > { %s1667_s27 = scalar_select %p1447_p4, 1, 0 }
  0x10   : > { %s1668_s28 = scalar_select %p1452_p6, 1, 0 }
  0x11   : > { %p1457_p8 = pnand %p929_p5, %p194_p7  ;;  %s207_s7 = sshll.u32 %s1371_s30, 4  ;;  %s208_s7 = int_to_ptr.vmem [resolvable:$true] %s207_s7 }
  0x12   : > { %s1372_s8 = smov [#allocation7]   ;;  %s1202_s11 = scalar_lea.vmem %s208_s7, 256 }
  0x13   : > { %s1669_s29 = scalar_select %p1457_p8, 1, 0 }
  0x14   : > { %p1127_p10 = pneg %p1457_p8  ;;  %s220_s9 = sshll.u32 %s1372_s8, 4  ;;  %s221_s9 = int_to_ptr.vmem [resolvable:$true] %s220_s9 }
  0x15   : > { %p1203_p13 = scmp.ne.s32.totalorder %s208_s7, %s1202_s11  ;;  %p1210_p5 = scmp.lt.s32.totalorder %s208_s7, %s208_s7 }
  0x16   : > { %p1466_p11 = pnand %p1127_p10, %p1662_p1  ;;  %p1211_p7 = scmp.lt.s32.totalorder %s1202_s11, %s1202_s11 }
  0x18   : > { %p1193_p12 = pneg %p1466_p11  ;;  %p1212_p9 = por %p1211_p7, %p1210_p5 }
  0x1a   : > { %p1205_p0 = pnand %p1203_p13, %p1193_p12 }
  0x1c   : > { %p1206_p3 = pneg %p1205_p0 }
  0x1e   : > { %p1213_p2 = pnand %p1212_p9, %p1206_p3 }
  0x20   : > { %1216 = shalt.err (!%p1213_p2)
}
  0x21   : > { %s1671_s1 = sld [smem:[#allocation15_spill]]  ;;  %s1228_s14 = scalar_lea.vmem %s221_s9, 6144 }
  0x22   : > { %p1229_p10 = scmp.ne.s32.totalorder %s221_s9, %s1228_s14  ;;  %p1236_p13 = scmp.lt.s32.totalorder %s221_s9, %s221_s9 }
  0x23   : > { %p1237_p0 = scmp.lt.s32.totalorder %s1228_s14, %s1228_s14 }
  0x24   : > { %p1231_p1 = pnand %p1229_p10, %p1193_p12 }
  0x25   : > { %p1238_p4 = por %p1237_p0, %p1236_p13 }
  0x26   : > { %p1232_p6 = pneg %p1231_p1 }
  0x27   : > { %1130 = dma.hbm_to_vmem [thread:$0]  (!%p1466_p11), %s1671_s1, 256, %s208_s7, [#allocation6]  }
  0x28   : > { %p1239_p8 = pnand %p1238_p4, %p1232_p6 }
  0x2a   : > { %1242 = shalt.err (!%p1239_p8)
}
  0x2b   : > { %s1373_s15 = smov 128   ;;  %s1374_s16 = smov 8  }
  0x2c   : > { %1133 = dma.hbm_to_vmem [thread:$0]  (!%p1466_p11), %s1658_s3, 6144, %s221_s9, [#allocation6], %s1373_s15, %s1373_s15, %s1374_s16  }
  0x2d   : > { %s1489_s19 = sadd.s32 1, %s1369_s24   ;;  %s34_s20 = sadd.s32 1, %s1365_s23 }
  0x2e   : > { %s31_s26 = ssub.s32 %s1369_s24, %s1489_s19  ;;  %p41_p1 = scmp.ne.s32.totalorder %s1365_s23, %s1361_s22 }
  0x2f   : > { %p32_p2 = scmp.eq.s32.totalorder %s31_s26, 0  ;;  %p42_p4 = scmp.eq.s32.totalorder %s1369_s24, 0 }
  0x30   : > { %p1672_p6 = scmp.eq.s32.totalorder %s1438_s25, 1  ;;  %p1147_p9 = scmp.lt.s32.totalorder %s1369_s24, 2 }
  0x31   : > { %s1505_s7 = scalar_select %p32_p2, %s1365_s23, %s34_s20  }
  0x32   : > { %p1499_p8 = por %p1672_p6, %p41_p1  ;;  %p43_p12 = por %p42_p4, %p41_p1 }
  0x33   : > { %s237_s8 = sand.u32 1, %s1365_s23   ;;  %s934_s9 = sshll.u32 %s1369_s24, 7 }
  0x34   : > { %s1673_s30 = scalar_select %p1499_p8, 1, 0 }
  0x35   : > { %s933_s10 = sshll.u32 %s237_s8, 3  ;;  %s1512_s13 = scalar_lea.hbm %s1655_s0, %s934_s9 }
  0x36   : > { %s241_s14 = scalar_lea.vmem [#allocation2], %s933_s10  ;;  %p1514_p11 = pnand %p1147_p9, %p43_p12 }
  0x37   : > { %s248_s15 = sshll.u32 %s241_s14, 4  ;;  %s238_s17 = scalar_lea.sflag [#allocation3], %s237_s8  ;;  %s249_s15 = int_to_ptr.vmem [resolvable:$true] %s248_s15 }
  0x38   : > { %s1243_s18 = scalar_lea.hbm %s1512_s13, 128  ;;  %p1245_p5 = pneg %p1514_p11 }
  0x39   : > { %p1244_p3 = scmp.ne.s32.totalorder %s1512_s13, %s1243_s18  ;;  %s1248_s9 = scalar_lea.hbm %s1655_s0, 256 }
  0x3a   : > { %p1249_p13 = scmp.lt.s32.totalorder %s1512_s13, %s1655_s0  ;;  %p1250_p0 = scmp.lt.s32.totalorder %s1248_s9, %s1243_s18 }
  0x3b   : > { %p1246_p7 = pnand %p1245_p5, %p1244_p3 }
  0x3c   : > { %p1251_p1 = por %p1250_p0, %p1249_p13 }
  0x3d   : > { %p1247_p10 = pneg %p1246_p7 }
  0x3f   : > { %p1252_p2 = pnand %p1251_p1, %p1247_p10 }
  0x41   : > { %1255 = shalt.err (!%p1252_p2)
}
  0x42   : > { %s1256_s12 = scalar_lea.vmem %s249_s15, 128  ;;  %s1375_s8 = smov [#allocation2]  }
  0x43   : > { %p1257_p4 = scmp.ne.s32.totalorder %s249_s15, %s1256_s12  ;;  %s1261_s14 = sshll.u32 %s1375_s8, 4  ;;  %s1262_s14 = int_to_ptr.vmem [resolvable:$false] %s1261_s14 }
  0x44   : > { %s1263_s1 = scalar_lea.vmem %s1262_s14, 256  ;;  %p1264_p12 = scmp.lt.s32.totalorder %s249_s15, %s1262_s14 }
  0x45   : > { %p1259_p6 = pnand %p1257_p4, %p1245_p5  ;;  %p1265_p3 = scmp.lt.s32.totalorder %s1263_s1, %s1256_s12 }
  0x47   : > { %p1260_p9 = pneg %p1259_p6  ;;  %p1266_p7 = por %p1265_p3, %p1264_p12 }
  0x49   : > { %p1267_p8 = pnand %p1266_p7, %p1260_p9 }
  0x4b   : > { %1270 = shalt.err (!%p1267_p8)
}
  0x4c   : > { %1137 = dma.hbm_to_vmem [thread:$0]  (!%p1514_p11), %s1512_s13, 128, %s249_s15, %s238_s17  }
  0x4d   : > { %p1675_p10 = scmp.ne.s32.totalorder %s1669_s29, 0 }
  0x4e   : > { %s1535_s18 = sand.u32 (!%p1675_p10), 1, %s1361_s22   ;;  %p1676_p5 = scmp.ne.s32.totalorder (!%p1675_p10), %s1667_s27, 0 }
  0x4f   : > { %257 = sbr.rel (%p1675_p10) target bundleno = 564 (0x234), region = 40  ;;  %s936_s20 = sshll.u32 (!%p1675_p10), %s1535_s18, 3 }
  0x50   : > { %s260_s26 = scalar_lea.sflag (!%p1675_p10), [#allocation3], %s1535_s18  ;;  %s263_s9 = scalar_lea.vmem (!%p1675_p10), [#allocation2], %s936_s20 }
  0x54   : > { %1340 = dma.done.wait (%p1676_p5), %s260_s26, 128  }
  0x55   : > { %1342 = vsyncadd (%p1676_p5), %s260_s26, 4294967168  ;;  %p1677_p8 = scmp.eq.s32.totalorder %s1438_s25, 0 }
  0x57   : > { %1344 = dma.done.wait (%p1677_p8), [#allocation6], 6400   ;;  %p1678_p11 = pmov %p1677_p8 }
  0x58   : > { %v1376_v0 = vmov 0.0   ;;  %v307_v1 = vld [vmem:[#allocation5 + $0x8] sm:$0xff]  ;;  %v306_v2 = vld [vmem:[#allocation5] sm:$0xff]  ;;  %v305_v3 = vld [vmem:[%s263_s9] sm:$0xff]  ;;  %vm308_vm0 = vcmask 64512   ;;  %v392_v37 = vlaneseq  ;;  %s939_s29 = sshll.u32 %s1535_s18, 4 }
  0x59   : > { %1346 = vsyncadd (%p1678_p11), [#allocation6], 4294960896  ;;  %376 = vmatprep.mubr.f32.mxu0 %v1376_v0  ;;  %342 = vmatprep.subr.mxu0 %v307_v1  ;;  %v497_v4 = vld [vmem:[#allocation7 + $0xf8] sm:$0xff]  ;;  %v496_v5 = vld [vmem:[#allocation7 + $0xf0] sm:$0xff]  ;;  %v1377_v38 = vmov 1935823168  }
  0x5a   : > { %343 = vmatpush1.msra.mxu0 %v306_v2  ;;  %1008 = vmatprep.subr.mxu1 %v497_v4  ;;  %v480_v6 = vld [vmem:[#allocation7 + $0x78] sm:$0xff]  ;;  %v495_v7 = vld [vmem:[#allocation7 + $0xe8] sm:$0xff]  ;;  %v479_v8 = vld [vmem:[#allocation7 + $0x70] sm:$0xff]  ;;  %v390_v39 = vunpack.c.l.s4 %v1377_v38  ;;  %v1548_v40 = vshrl.u32 %v392_v37, 7  ;;  %s297_s16 = scalar_lea.vmem [#allocation8], %s939_s29  ;;  %s953_s11 = sshll.u32 %s1438_s25, 8 }
  0x5b   : > { %941 = vmatmul.mubr.msk.f32.vlgmr.msra.gmra.mxu0 %vm308_vm0, %v305_v3  ;;  %1009 = vmatpush3.msra.mxu1 %v497_v4  ;;  %v494_v9 = vld [vmem:[#allocation7 + $0xe0] sm:$0xff]  ;;  %v478_v10 = vld [vmem:[#allocation7 + $0x68] sm:$0xff]  ;;  %v493_v11 = vld [vmem:[#allocation7 + $0xd8] sm:$0xff]  ;;  %s791_s17 = sshll.u32 %s297_s16, 4  ;;  %s1588_s8 = scalar_lea.hbm %s1660_s5, %s953_s11  ;;  %s1583_s17 = int_to_ptr.vmem [resolvable:$true] %s791_s17 }
  0x5c   : > { %1010 = vmatprep.subr.mxu1 %v496_v5  ;;  %1043 = vmatprep.subr.mxu0 %v480_v6  ;;  %v477_v12 = vld [vmem:[#allocation7 + $0x60] sm:$0xff]  ;;  %v492_v13 = vld [vmem:[#allocation7 + $0xd0] sm:$0xff]  ;;  %v476_v14 = vld [vmem:[#allocation7 + $0x58] sm:$0xff]  ;;  %v391_v41 = vunpack.c.0.s8 %v390_v39  ;;  %v419_v43 = vand.u32 15, %v1548_v40  ;;  %vm454_vm2 = vcmp.lt.s32.totalorder %v1548_v40, 7  ;;  %vm441_vm3 = vcmp.lt.s32.totalorder %v1548_v40, 1 }
  0x5d   : > { %1011 = vmatpush3.msra.mxu1 %v496_v5  ;;  %1044 = vmatpush3.msra.mxu0 %v480_v6  ;;  %v491_v15 = vld [vmem:[#allocation7 + $0xc8] sm:$0xff]  ;;  %v475_v16 = vld [vmem:[#allocation7 + $0x50] sm:$0xff]  ;;  %v490_v17 = vld [vmem:[#allocation7 + $0xc0] sm:$0xff]  ;;  %s773_s14 = scalar_lea.sflag [#allocation4], %s1535_s18  ;;  %s1271_s20 = scalar_lea.vmem %s1583_s17, 256 }
  0x5e   : > { %1012 = vmatprep.subr.mxu1 %v495_v7  ;;  %1045 = vmatprep.subr.mxu0 %v479_v8  ;;  %v474_v18 = vld [vmem:[#allocation7 + $0x48] sm:$0xff]  ;;  %v489_v19 = vld [vmem:[#allocation7 + $0xb8] sm:$0xff]  ;;  %v473_v20 = vld [vmem:[#allocation7 + $0x40] sm:$0xff]  ;;  %v394_v44 = vsub.s32 %v391_v41, %v1548_v40  ;;  %vm444_vm1 = vcmp.ne.s32.totalorder %v419_v43, 0  ;;  %p1272_p13 = scmp.ne.s32.totalorder %s1583_s17, %s1271_s20  ;;  %p1679_p0 = scmp.ne.s32.totalorder %s1673_s30, 0 }
  0x5f   : > { %1013 = vmatpush3.msra.mxu1 %v495_v7  ;;  %1046 = vmatpush3.msra.mxu0 %v479_v8  ;;  %v488_v21 = vld [vmem:[#allocation7 + $0xb0] sm:$0xff]  ;;  %v472_v22 = vld [vmem:[#allocation7 + $0x38] sm:$0xff]  ;;  %v487_v23 = vld [vmem:[#allocation7 + $0xa8] sm:$0xff]  ;;  %v943_v53 = vsel %vm444_vm1, 1.0, %v1376_v0  ;;  %v414_v8 = vadd.s32 8, %v1548_v40  ;;  %s1378_s26 = smov [#allocation8]  }
  0x60   : > { %1014 = vmatprep.subr.mxu1 %v494_v9  ;;  %1047 = vmatprep.subr.mxu0 %v478_v10  ;;  %v486_v24 = vld [vmem:[#allocation7 + $0xa0] sm:$0xff]  ;;  %v485_v25 = vld [vmem:[#allocation7 + $0x98] sm:$0xff]  ;;  %v471_v26 = vld [vmem:[#allocation7 + $0x30] sm:$0xff]  ;;  %p1273_p1 = pnand %p1272_p13, %p1679_p0  ;;  %s1275_s9 = sshll.u32 %s1378_s26, 4  ;;  %s1276_s9 = int_to_ptr.vmem [resolvable:$false] %s1275_s9 }
  0x61   : > { %1015 = vmatpush3.msra.mxu1 %v494_v9  ;;  %1048 = vmatpush3.msra.mxu0 %v478_v10  ;;  %v484_v27 = vld [vmem:[#allocation7 + $0x90] sm:$0xff]  ;;  %v470_v28 = vld [vmem:[#allocation7 + $0x28] sm:$0xff]  ;;  %v469_v30 = vld [vmem:[#allocation7 + $0x20] sm:$0xff]  ;;  %s1277_s1 = scalar_lea.vmem %s1276_s9, 512  ;;  %p1278_p4 = scmp.lt.s32.totalorder %s1583_s17, %s1276_s9 }
  0x62   : > { %1016 = vmatprep.subr.mxu1 %v493_v11  ;;  %1049 = vmatprep.subr.mxu0 %v477_v12  ;;  %v483_v29 = vld [vmem:[#allocation7 + $0x88] sm:$0xff]  ;;  %v482_v31 = vld [vmem:[#allocation7 + $0x80] sm:$0xff]  ;;  %v468_v32 = vld [vmem:[#allocation7 + $0x18] sm:$0xff]  ;;  %p1274_p2 = pneg %p1273_p1  ;;  %p1279_p6 = scmp.lt.s32.totalorder %s1277_s1, %s1271_s20 }
  0x63   : > { %1017 = vmatpush3.msra.mxu1 %v493_v11  ;;  %1050 = vmatpush3.msra.mxu0 %v477_v12  ;;  %v467_v33 = vld [vmem:[#allocation7 + $0x10] sm:$0xff]  ;;  %v664_v34 = vld [vmem:[#allocation7 + $0x178] sm:$0xff]  ;;  %v466_v35 = vld [vmem:[#allocation7 + $0x8] sm:$0xff]  ;;  %v426_v11 = vand.u32 15, %v414_v8 }
  0x64   : > { %1018 = vmatprep.subr.mxu1 %v492_v13  ;;  %1051 = vmatprep.subr.mxu0 %v476_v14  ;;  %v465_v36 = vld [vmem:[#allocation7] sm:$0xff]  ;;  %v663_v56 = vld [vmem:[#allocation7 + $0x170] sm:$0xff]  ;;  %v662_v60 = vld [vmem:[#allocation7 + $0x168] sm:$0xff]  ;;  %p1280_p9 = por %p1279_p6, %p1278_p4 }
  0x65   : > { %1019 = vmatpush3.msra.mxu1 %v492_v13  ;;  %1052 = vmatpush3.msra.mxu0 %v476_v14  ;;  %v942_v48 = vld [vmem:[%s1657_s2] ss:$0 sm:$0xff]  ;;  %v660_v2 = vld [vmem:[#allocation7 + $0x158] sm:$0xff]  ;;  %v659_v3 = vld [vmem:[#allocation7 + $0x150] sm:$0xff]  ;;  %vm458_vm4 = vcmp.ne.s32.totalorder %v426_v11, 15 }
  0x66   : > { %1020 = vmatprep.subr.mxu1 %v491_v15  ;;  %1053 = vmatprep.subr.mxu0 %v475_v16  ;;  %v661_v63 = vld [vmem:[#allocation7 + $0x160] sm:$0xff]  ;;  %v658_v4 = vld [vmem:[#allocation7 + $0x148] sm:$0xff]  ;;  %v656_v6 = vld [vmem:[#allocation7 + $0x138] sm:$0xff]  ;;  %p1281_p12 = pnand %p1280_p9, %p1274_p2 }
  0x67   : > { %1021 = vmatpush3.msra.mxu1 %v491_v15  ;;  %1054 = vmatpush3.msra.mxu0 %v475_v16  ;;  %v657_v5 = vld [vmem:[#allocation7 + $0x140] sm:$0xff]  ;;  %v655_v7 = vld [vmem:[#allocation7 + $0x130] sm:$0xff]  ;;  %v654_v9 = vld [vmem:[#allocation7 + $0x128] sm:$0xff]  ;;  %v944_v15 = vsel %vm458_vm4, 1.0, %v1376_v0 }
  0x68   : > { %1022 = vmatprep.subr.mxu1 %v490_v17  ;;  %1055 = vmatprep.subr.mxu0 %v474_v18  ;;  %v653_v10 = vld [vmem:[#allocation7 + $0x120] sm:$0xff]  ;;  %v652_v12 = vld [vmem:[#allocation7 + $0x118] sm:$0xff]  ;;  %v651_v13 = vld [vmem:[#allocation7 + $0x110] sm:$0xff] }
  0x69   : > { %1023 = vmatpush3.msra.mxu1 %v490_v17  ;;  %1056 = vmatpush3.msra.mxu0 %v474_v18  ;;  %v650_v14 = vld [vmem:[#allocation7 + $0x108] sm:$0xff]  ;;  %v649_v17 = vld [vmem:[#allocation7 + $0x100] sm:$0xff] }
  0x6a   : > { %1024 = vmatprep.subr.mxu1 %v489_v19  ;;  %1057 = vmatprep.subr.mxu0 %v473_v20  ;;  %v945_v0 = vld [vmem:[%s1659_s4] ss:$0 sm:$0xff] }
  0x6b   : > { %1025 = vmatpush3.msra.mxu1 %v489_v19  ;;  %1058 = vmatpush3.msra.mxu0 %v473_v20 }
  0x6c   : > { %1026 = vmatprep.subr.mxu1 %v488_v21  ;;  %1059 = vmatprep.subr.mxu0 %v472_v22 }
  0x6d   : > { %1027 = vmatpush3.msra.mxu1 %v488_v21  ;;  %1060 = vmatpush3.msra.mxu0 %v472_v22 }
  0x6e   : > { %1028 = vmatprep.subr.mxu1 %v487_v23  ;;  %1061 = vmatprep.subr.mxu0 %v471_v26 }
  0x6f   : > { %1029 = vmatpush3.msra.mxu1 %v487_v23  ;;  %1062 = vmatpush3.msra.mxu0 %v471_v26 }
  0x70   : > { %1030 = vmatprep.subr.mxu1 %v486_v24  ;;  %1063 = vmatprep.subr.mxu0 %v470_v28 }
  0x71   : > { %1031 = vmatpush3.msra.mxu1 %v486_v24  ;;  %1064 = vmatpush3.msra.mxu0 %v470_v28 }
  0x72   : > { %1032 = vmatprep.subr.mxu1 %v485_v25  ;;  %1065 = vmatprep.subr.mxu0 %v469_v30 }
  0x73   : > { %1033 = vmatpush3.msra.mxu1 %v485_v25  ;;  %1066 = vmatpush3.msra.mxu0 %v469_v30 }
  0x74   : > { %1034 = vmatprep.subr.mxu1 %v484_v27  ;;  %1067 = vmatprep.subr.mxu0 %v468_v32 }
  0x75   : > { %1035 = vmatpush3.msra.mxu1 %v484_v27  ;;  %1068 = vmatpush3.msra.mxu0 %v468_v32 }
  0x76   : > { %1036 = vmatprep.subr.mxu1 %v483_v29  ;;  %1069 = vmatprep.subr.mxu0 %v467_v33 }
  0x77   : > { %1037 = vmatpush3.msra.mxu1 %v483_v29  ;;  %1070 = vmatpush3.msra.mxu0 %v467_v33 }
  0x78   : > { %1038 = vmatprep.subr.mxu1 %v482_v31  ;;  %1071 = vmatprep.subr.mxu0 %v466_v35 }
  0x79   : > { %1039 = vmatpush3.msra.mxu1 %v482_v31  ;;  %1072 = vmatpush3.msra.mxu0 %v466_v35 }
  0x7a   : > { %1078 = vmatprep.subr.mxu1 %v664_v34  ;;  %1073 = vmatprep.subr.mxu0 %v465_v36 }
  0x7b   : > { %1074 = vmatpush3.msra.mxu0 %v465_v36 }
 0x11b   : > { %v378_v42 = vpop.f32.mrf.mxu0 }
 0x11d   : > { %v380_v45 = vpop.f32.mrf.mxu0 }
 0x11e   : > { %v385_v46 = vcombine.low %v378_v42, %v380_v45  ;;  %v386_v47 = vcombine.high %v378_v42, %v380_v45 }
 0x120   : > { %v395_v49 = vrot.slane %v385_v46, %v394_v44  ;;  %v402_v50 = vrot.slane %v386_v47, %v394_v44 }
 0x122   : > { %v1555_v51 = vadd.f32 %v942_v48, %v395_v49  ;;  %v1557_v52 = vadd.f32 %v942_v48, %v402_v50 }
 0x124   : > { %v439_v54 = vrot.slane %v1555_v51, 7  ;;  %1040 = vmatprep.mubr.f32.mxu1 %v1555_v51  ;;  %v440_v55 = vrot.slane %v1557_v52, 7  ;;  %v452_v57 = vrot.slane %v1555_v51, 1  ;;  %v453_v58 = vrot.slane %v1557_v52, 1 }
 0x125   : > { %1041 = vmatmul.mubr.f32.vlgmr.msra.gmra.mxu1 %v1557_v52 }
 0x126   : > { %1079 = vmatpush3.msra.mxu1 %v664_v34  ;;  %v455_v59 = vsel %vm454_vm2, %v452_v57, %v453_v58  ;;  %v443_v61 = vsel %vm441_vm3, %v440_v55, %v439_v54  ;;  %v442_v1 = vsel %vm441_vm3, %v439_v54, %v440_v55  ;;  %v456_v16 = vsel %vm454_vm2, %v453_v58, %v452_v57 }
 0x127   : > { %1080 = vmatprep.subr.mxu1 %v663_v56  ;;  %1110 = vmatprep.mubr.f32.mxu1 %v455_v59  ;;  %v450_v62 = vmul.f32 %v943_v53, %v443_v61  ;;  %v464_v18 = vmul.f32 %v944_v15, %v456_v16 }
 0x128   : > { %1081 = vmatpush3.msra.mxu1 %v663_v56 }
 0x129   : > { %1082 = vmatprep.subr.mxu1 %v662_v60  ;;  %1075 = vmatprep.mubr.f32.mxu0 %v450_v62 }
 0x12a   : > { %1083 = vmatpush3.msra.mxu1 %v662_v60  ;;  %1076 = vmatmul.mubr.f32.vlgmr.msra.gmra.mxu0 %v442_v1 }
 0x12b   : > { %1084 = vmatprep.subr.mxu1 %v661_v63 }
 0x12c   : > { %1085 = vmatpush3.msra.mxu1 %v661_v63 }
 0x12d   : > { %1086 = vmatprep.subr.mxu1 %v660_v2 }
 0x12e   : > { %1087 = vmatpush3.msra.mxu1 %v660_v2 }
 0x12f   : > { %1088 = vmatprep.subr.mxu1 %v659_v3 }
 0x130   : > { %1089 = vmatpush3.msra.mxu1 %v659_v3 }
 0x131   : > { %1090 = vmatprep.subr.mxu1 %v658_v4 }
 0x132   : > { %1091 = vmatpush3.msra.mxu1 %v658_v4 }
 0x133   : > { %1092 = vmatprep.subr.mxu1 %v657_v5 }
 0x134   : > { %1093 = vmatpush3.msra.mxu1 %v657_v5 }
 0x135   : > { %1094 = vmatprep.subr.mxu1 %v656_v6 }
 0x136   : > { %1095 = vmatpush3.msra.mxu1 %v656_v6 }
 0x137   : > { %1096 = vmatprep.subr.mxu1 %v655_v7 }
 0x138   : > { %1097 = vmatpush3.msra.mxu1 %v655_v7 }
 0x139   : > { %1098 = vmatprep.subr.mxu1 %v654_v9 }
 0x13a   : > { %1099 = vmatpush3.msra.mxu1 %v654_v9 }
 0x13b   : > { %1100 = vmatprep.subr.mxu1 %v653_v10 }
 0x13c   : > { %1101 = vmatpush3.msra.mxu1 %v653_v10 }
 0x13d   : > { %1102 = vmatprep.subr.mxu1 %v652_v12 }
 0x13e   : > { %1103 = vmatpush3.msra.mxu1 %v652_v12 }
 0x13f   : > { %1104 = vmatprep.subr.mxu1 %v651_v13 }
 0x140   : > { %1105 = vmatpush3.msra.mxu1 %v651_v13 }
 0x141   : > { %1106 = vmatprep.subr.mxu1 %v650_v14 }
 0x142   : > { %1107 = vmatpush3.msra.mxu1 %v650_v14 }
 0x143   : > { %1108 = vmatprep.subr.mxu1 %v649_v17 }
 0x144   : > { %1109 = vmatpush3.msra.mxu1 %v649_v17 }
 0x145   : > { %1111 = vmatmul.mubr.f32.vlgmr.msra.gmra.mxu1 %v464_v18 }
 0x1e5   : > { %v1042_v19 = vpop.f32.mrf.mxu1 }
 0x1e7   : > { %v564_v21 = vpop.f32.mrf.mxu1 }
 0x1ea   : > { %v1077_v20 = vpop.f32.mrf.mxu0 }
 0x1eb   : > { %v645_v23 = vadd.f32 %v1077_v20, %v1042_v19 }
 0x1ec   : > { %v639_v22 = vpop.f32.mrf.mxu0 }
 0x1ed   : > { %v640_v25 = vadd.f32 %v639_v22, %v564_v21 }
 0x205   : > { %v1112_v24 = vpop.f32.mrf.mxu1 }
 0x206   : > { %v741_v26 = vadd.f32 %v1112_v24, %v645_v23 }
 0x207   : > { %v731_v27 = vpop.f32.mrf.mxu1 }
 0x208   : > { %v750_v28 = vadd.f32 %v945_v0, %v741_v26  ;;  %v740_v29 = vadd.f32 %v731_v27, %v640_v25 }
 0x20a   : > { %752 = vst [vmem:[%s297_s16 + $0x8] sm:$0xff] %v750_v28  ;;  %v749_v30 = vadd.f32 %v945_v0, %v740_v29  ;;  %v761_v31 = vmul.f32 %v750_v28, %v750_v28 }
 0x20c   : > { %751 = vst [vmem:[%s297_s16] sm:$0xff] %v749_v30  ;;  %v753_v32 = vadd.f32 %v750_v28, %v749_v30  ;;  %v760_v33 = vmul.f32 %v749_v30, %v749_v30 }
 0x20d   : > { %1284 = shalt.err (!%p1281_p12)
}
 0x20e   : > { %s1285_s27 = scalar_lea.hbm %s1588_s8, 256  ;;  %s1289_s15 = scalar_lea.hbm %s1660_s5, 512 }
 0x20f   : > { %p1286_p3 = scmp.ne.s32.totalorder %s1588_s8, %s1285_s27  ;;  %p1290_p5 = scmp.lt.s32.totalorder %s1588_s8, %s1660_s5 }
 0x210   : > { %p1291_p8 = scmp.lt.s32.totalorder %s1289_s15, %s1285_s27 }
 0x211   : > { %p1287_p7 = pnand %p1286_p3, %p1679_p0 }
 0x212   : > { %p1292_p11 = por %p1291_p8, %p1290_p5 }
 0x213   : > { %p1288_p10 = pneg %p1287_p7 }
 0x215   : > { %p1293_p13 = pnand %p1292_p11, %p1288_p10 }
 0x217   : > { %1296 = shalt.err (!%p1293_p13)
}
 0x218   : > { %s1379_s10 = smov 128   ;;  %s1380_s12 = smov 8   ;;  %v754_v34 = vrot.slane %v753_v32, 4  ;;  %v762_v35 = vadd.f32 %v761_v31, %v760_v33  ;;  %vm769_vm5 = vcmask 1040384  }
 0x219   : > { %1123 = dma.vmem_to_hbm [thread:$0]  (%p1679_p0), %s1583_s17, 256, %s1588_s8, %s773_s14, %s1379_s10, %s1379_s10, %s1380_s12  }
 0x21a   : > { %v755_v36 = vadd.f32 %v754_v34, %v753_v32  ;;  %v763_v37 = vrot.slane %v762_v35, 4  ;;  %s940_s20 = sshll.u32 %s1535_s18, 1  ;;  %s950_s26 = sshll.u32 %s1438_s25, 5 }
 0x21b   : > { %s304_s9 = scalar_lea.vmem [#allocation9], %s940_s20  ;;  %s1618_s14 = scalar_lea.hbm %s1661_s6, %s950_s26 }
 0x21c   : > { %v756_v38 = vrot.slane %v755_v36, 2  ;;  %v764_v39 = vadd.f32 %v763_v37, %v762_v35  ;;  %s807_s1 = sshll.u32 %s304_s9, 4  ;;  %s778_s27 = scalar_lea.sflag [#allocation10], %s1535_s18  ;;  %s808_s1 = int_to_ptr.vmem [resolvable:$true] %s807_s1 }
 0x21d   : > { %s1297_s29 = scalar_lea.vmem %s808_s1, 32  ;;  %s1381_s25 = smov [#allocation9]  }
 0x21e   : > { %v757_v40 = vadd.f32 %v756_v38, %v755_v36  ;;  %v765_v41 = vrot.slane %v764_v39, 2  ;;  %p1298_p1 = scmp.ne.s32.totalorder %s808_s1, %s1297_s29  ;;  %s1301_s13 = sshll.u32 %s1381_s25, 4  ;;  %s1302_s13 = int_to_ptr.vmem [resolvable:$false] %s1301_s13 }
 0x21f   : > { %s1303_s15 = scalar_lea.vmem %s1302_s13, 64  ;;  %p1304_p6 = scmp.lt.s32.totalorder %s808_s1, %s1302_s13 }
 0x220   : > { %v758_v42 = vrot.slane %v757_v40, 1  ;;  %v766_v43 = vadd.f32 %v765_v41, %v764_v39  ;;  %p1299_p2 = pnand %p1298_p1, %p1679_p0  ;;  %p1305_p9 = scmp.lt.s32.totalorder %s1303_s15, %s1297_s29 }
 0x222   : > { %v767_v44 = vrot.slane %v766_v43, 1  ;;  %v759_v45 = vadd.f32 %v758_v42, %v757_v40  ;;  %p1300_p4 = pneg %p1299_p2  ;;  %p1306_p12 = por %p1305_p9, %p1304_p6 }
 0x224   : > { %v768_v46 = vadd.f32 %v767_v44, %v766_v43  ;;  %p1307_p3 = pnand %p1306_p12, %p1300_p4 }
 0x226   : > { %v770_v47 = vsel %vm769_vm5, %v759_v45, %v768_v46 }
 0x227   : > { %771 = vst [vmem:[%s304_s9] sm:$0x3] %v770_v47 }
 0x228   : > { %1310 = shalt.err (!%p1307_p3)
}
 0x229   : > { %s1311_s16 = scalar_lea.hbm %s1618_s14, 32  ;;  %s1315_s10 = scalar_lea.hbm %s1661_s6, 64 }
 0x22a   : > { %p1312_p7 = scmp.ne.s32.totalorder %s1618_s14, %s1311_s16  ;;  %p1316_p8 = scmp.lt.s32.totalorder %s1618_s14, %s1661_s6 }
 0x22b   : > { %p1317_p11 = scmp.lt.s32.totalorder %s1315_s10, %s1311_s16 }
 0x22c   : > { %p1313_p10 = pnand %p1312_p7, %p1679_p0 }
 0x22d   : > { %p1318_p13 = por %p1317_p11, %p1316_p8 }
 0x22e   : > { %p1314_p5 = pneg %p1313_p10 }
 0x230   : > { %p1319_p1 = pnand %p1318_p13, %p1314_p5 }
 0x232   : > { %1322 = shalt.err (!%p1319_p1)
}
 0x233   : > { %1124 = dma.vmem_to_hbm [thread:$0]  (%p1679_p0), %s808_s1, 32, %s1618_s14, %s778_s27  }
 0x234 PF: > { %s819_s26 = sand.u32 1, %s1357_s21   ;;  %p1680_p2 = scmp.ne.s32.totalorder %s1668_s28, 0 }
 0x235   : > { %p1681_p4 = scmp.ge.s32.totalorder %s1369_s24, 2  ;;  %s820_s9 = scalar_lea.sflag [#allocation4], %s819_s26 }
 0x237   : > { %p1139_p6 = pnand %p1681_p4, %p1680_p2 }
 0x239   : > { %p1140_p9 = pneg %p1139_p6 }
 0x23b   : > { %1348 = dma.done.wait (%p1140_p9), %s820_s9, 256  }
 0x23c   : > { %1350 = vsyncadd (%p1140_p9), %s820_s9, 4294967040  ;;  %s829_s17 = scalar_lea.sflag [#allocation10], %s819_s26 }
 0x23d   : > { %1352 = dma.done.wait (%p1140_p9), %s829_s17, 32  }
 0x23e   : > { %1354 = vsyncadd (%p1140_p9), %s829_s17, 4294967264  ;;  %p24_p0 = scmp.ge.s32.totalorder %s1489_s19, 4   ;;  %s1682_s21 = smov %s1361_s22 }
 0x23f   : > { %s1683_s22 = smov %s1365_s23  ;;  %s1684_s23 = smov %s1505_s7 }
 0x240   : > { %s1685_s24 = smov %s1489_s19  ;;  %26 = sbr.rel (!%p24_p0) target bundleno = 10 (0xa), region = 112 }
 0x245   :  { %834 = vsyncpa [#allocation3], 1 }
 0x246   :  { %836 = vsyncpa [#allocation3 + $0x1], 1 }
 0x247   :  { %837 = vsyncpa [#allocation6], 1 }
 0x248   :  { %838 = vsyncpa [#allocation4], 1 }
 0x249   :  { %840 = vsyncpa [#allocation4 + $0x1], 1 }
 0x24a   :  { %841 = vsyncpa [#allocation10], 1 }
 0x24b   :  { %843 = vsyncpa [#allocation10 + $0x1], 1 }

</bundles_post_ra>
